<compile_context>
chip_gen: v7x
topology: tpu7x:2x2x1
jax: 0.10.0
libtpu: 0.0.40
codegen_flags: <defaults>
</compile_context>

<pallas_src>
import jax
import jax.numpy as jnp
from jax import lax
from jax.experimental import pallas as pl
from jax.experimental.pallas import tpu as pltpu


def lstm_tagger_kernel(xg_ref, w_hh_ref, w_tag_ref, b_tag_ref,
                       h0_ref, c0_ref,
                       tag_ref, hn_ref, cn_ref,
                       hseq_scratch):
    S, G = xg_ref.shape          # G == 4H
    H = h0_ref.shape[1]

    xg = xg_ref[...]             # (S, 4H)  precomputed input projection (+ both biases)
    w_hh_t = w_hh_ref[...]       # (H, 4H)  pre-transposed recurrent weights
    h = h0_ref[...]              # (1, H)
    c = c0_ref[...]              # (1, H)

    # Lane mask selecting the g-gate block [2H, 3H) of the (1, 4H) gates row.
    # Hoisted out of the loop (broadcasts are not CSE'd by JAX).
    lane = lax.broadcasted_iota(jnp.int32, (1, G), 1)
    g_mask = (lane >= 2 * H) & (lane < 3 * H)

    # S is a compile-time constant -> fully unrolled recurrence, static slices.
    for t in range(S):
        gates = xg[t:t + 1, :] + jnp.dot(
            h, w_hh_t, preferred_element_type=jnp.float32)          # (1, 4H)
        # One sigmoid + one tanh over the full row (EUP); g selected by mask.
        act = jnp.where(g_mask, jnp.tanh(gates), jax.nn.sigmoid(gates))
        i_g = act[:, 0:H]
        f_g = act[:, H:2 * H]
        g_g = act[:, 2 * H:3 * H]
        o_g = act[:, 3 * H:4 * H]
        c = f_g * c + i_g * g_g
        h = o_g * jnp.tanh(c)
        hseq_scratch[pl.ds(t, 1), :] = h

    # hidden2tag on the full sequence: (S, H) x (H, T) on the MXU, no transpose.
    tag_ref[...] = (
        jnp.dot(hseq_scratch[...], w_tag_ref[...],
                preferred_element_type=jnp.float32) + b_tag_ref[...]
    )
    hn_ref[...] = h
    cn_ref[...] = c


def lstm_tagger_forward(sentence, params, hidden):
    """sentence: int32 (S,); hidden: (h0, c0) each (1, 1, H)."""
    w_ih, w_hh, b_ih, b_hh, w_tag, b_tag = (
        params["w_ih"], params["w_hh"], params["b_ih"], params["b_hh"],
        params["w_tag"], params["b_tag"])
    h0, c0 = hidden
    S = sentence.shape[0]
    E = w_ih.shape[1]
    H = w_hh.shape[1]
    T = w_tag.shape[0]

    # one_hot(sentence, E) @ W_ih.T is a row gather of W_ih.T, so skip
    # materializing the (S, E) one-hot and the input-projection MXU pass.
    # Ids outside [0, E) reproduce one_hot's all-zero row.
    w_ih_t = w_ih.T                                                  # (E, 4H)
    valid = ((sentence >= 0) & (sentence < E))[:, None]
    rows = jnp.take(w_ih_t, jnp.clip(sentence, 0, E - 1), axis=0)    # (S, 4H)
    b = (b_ih + b_hh).reshape(1, 4 * H)
    xg = jnp.where(valid, rows, 0.0) + b                             # (S, 4H)

    vmem_spec = pl.BlockSpec(memory_space=pltpu.MemorySpace.VMEM)

    tag_space, h_n, c_n = pl.pallas_call(
        lstm_tagger_kernel,
        out_shape=(
            jax.ShapeDtypeStruct((S, T), jnp.float32),
            jax.ShapeDtypeStruct((1, H), jnp.float32),
            jax.ShapeDtypeStruct((1, H), jnp.float32),
        ),
        in_specs=[vmem_spec] * 6,
        out_specs=(vmem_spec, vmem_spec, vmem_spec),
        scratch_shapes=[
            pltpu.VMEM((S, H), jnp.float32),       # hseq: lstm_out rows
        ],
    )(xg, w_hh.T, w_tag.T, b_tag.reshape(1, T),
      h0.reshape(1, H), c0.reshape(1, H))

    return tag_space, (h_n.reshape(1, 1, H), c_n.reshape(1, 1, H))


def lstm_tagger_reference(sentence, params, hidden):
    """Pure-JAX reference of the same forward pass (for correctness check)."""
    w_ih, w_hh, b_ih, b_hh, w_tag, b_tag = (
        params["w_ih"], params["w_hh"], params["b_ih"], params["b_hh"],
        params["w_tag"], params["b_tag"])
    H = w_hh.shape[1]
    E = w_ih.shape[1]
    h = hidden[0].reshape(1, H)
    c = hidden[1].reshape(1, H)
    embeds = jax.nn.one_hot(sentence, E, dtype=jnp.float32)
    outs = []
    for t in range(sentence.shape[0]):
        x = embeds[t:t + 1]
        gates = x @ w_ih.T + b_ih + h @ w_hh.T + b_hh
        i = jax.nn.sigmoid(gates[:, 0:H])
        f = jax.nn.sigmoid(gates[:, H:2 * H])
        g = jnp.tanh(gates[:, 2 * H:3 * H])
        o = jax.nn.sigmoid(gates[:, 3 * H:4 * H])
        c = f * c + i * g
        h = o * jnp.tanh(c)
        outs.append(h)
    hseq = jnp.concatenate(outs, axis=0)
    tag = hseq @ w_tag.T + b_tag
    return tag, (h.reshape(1, 1, H), c.reshape(1, 1, H))


def init_params(key, embedding_dim, hidden_dim, vocab_size, tagset_size):
    # Deterministic synthetic init (shapes follow nn.LSTM / nn.Linear).
    del vocab_size  # forward() uses one-hot of depth embedding_dim, not the embedding table
    ks = jax.random.split(key, 6)
    H, E, T = hidden_dim, embedding_dim, tagset_size
    scale = 1.0 / jnp.sqrt(H)
    return {
        "w_ih": jax.random.uniform(ks[0], (4 * H, E), jnp.float32, -scale, scale),
        "w_hh": jax.random.uniform(ks[1], (4 * H, H), jnp.float32, -scale, scale),
        "b_ih": jax.random.uniform(ks[2], (4 * H,), jnp.float32, -scale, scale),
        "b_hh": jax.random.uniform(ks[3], (4 * H,), jnp.float32, -scale, scale),
        "w_tag": jax.random.uniform(ks[4], (T, H), jnp.float32, -scale, scale),
        "b_tag": jax.random.uniform(ks[5], (T,), jnp.float32, -scale, scale),
    }


if __name__ == "__main__":
    SEQ_LEN = 8
    EMBEDDING_DIM = 16   # == one-hot depth used by the reference forward()
    HIDDEN_DIM = 32
    VOCAB_SIZE = 16
    TAGSET_SIZE = 8

    key = jax.random.PRNGKey(0)
    k_sent, k_params = jax.random.split(key)

    sentence = jax.random.randint(k_sent, (SEQ_LEN,), 0, VOCAB_SIZE, dtype=jnp.int32)
    params = init_params(k_params, EMBEDDING_DIM, HIDDEN_DIM, VOCAB_SIZE, TAGSET_SIZE)

    # init_hidden(): zeros (1, 1, hidden_dim)
    hidden0 = (jnp.zeros((1, 1, HIDDEN_DIM), jnp.float32),
               jnp.zeros((1, 1, HIDDEN_DIM), jnp.float32))

    fwd = jax.jit(lstm_tagger_forward)
    tag_space, (h_n, c_n) = fwd(sentence, params, hidden0)
    jax.block_until_ready((tag_space, h_n, c_n))

    assert tag_space.shape == (SEQ_LEN, TAGSET_SIZE)
    assert h_n.shape == (1, 1, HIDDEN_DIM) and c_n.shape == (1, 1, HIDDEN_DIM)

    # Numerical check against the pure-JAX reference.
    ref_tag, (ref_h, ref_c) = lstm_tagger_reference(sentence, params, hidden0)
    assert jnp.allclose(tag_space, ref_tag, rtol=1e-3, atol=1e-3)
    assert jnp.allclose(h_n, ref_h, rtol=1e-3, atol=1e-3)
    assert jnp.allclose(c_n, ref_c, rtol=1e-3, atol=1e-3)

    print("KERNEL_OK")
</pallas_src>

<mosaic_0001>
module attributes {stable_mosaic.version = 11 : i64} {
  func.func @lstm_tagger_kernel(%arg0: memref<8x128xf32, #tpu.memory_space<vmem>>, %arg1: memref<32x128xf32, #tpu.memory_space<vmem>>, %arg2: memref<32x8xf32, #tpu.memory_space<vmem>>, %arg3: memref<1x8xf32, #tpu.memory_space<vmem>>, %arg4: memref<1x32xf32, #tpu.memory_space<vmem>>, %arg5: memref<1x32xf32, #tpu.memory_space<vmem>>, %arg6: memref<8x8xf32, #tpu.memory_space<vmem>>, %arg7: memref<1x32xf32, #tpu.memory_space<vmem>>, %arg8: memref<1x32xf32, #tpu.memory_space<vmem>>, %arg9: memref<8x32xf32, #tpu.memory_space<vmem>>) attributes {dimension_semantics = [], scalar_prefetch = 0 : i64, scratch_operands = 1 : i64, tpu.core_type = #tpu.core_type<tc>} {
    %c0 = arith.constant 0 : index
    %c0_0 = arith.constant 0 : index
    %0 = vector.load %arg0[%c0, %c0_0] : memref<8x128xf32, #tpu.memory_space<vmem>>, vector<8x128xf32>
    %c0_1 = arith.constant 0 : index
    %c0_2 = arith.constant 0 : index
    %1 = vector.load %arg1[%c0_1, %c0_2] : memref<32x128xf32, #tpu.memory_space<vmem>>, vector<32x128xf32>
    %c0_3 = arith.constant 0 : index
    %c0_4 = arith.constant 0 : index
    %2 = vector.load %arg4[%c0_3, %c0_4] : memref<1x32xf32, #tpu.memory_space<vmem>>, vector<1x32xf32>
    %c0_5 = arith.constant 0 : index
    %c0_6 = arith.constant 0 : index
    %3 = vector.load %arg5[%c0_5, %c0_6] : memref<1x32xf32, #tpu.memory_space<vmem>>, vector<1x32xf32>
    %4 = tpu.iota {dimensions = array<i32: 1>} : vector<1x128xi32>
    %c64_i32 = arith.constant 64 : i32
    %5 = vector.broadcast %c64_i32 : i32 to vector<1x128xi32>
    %6 = arith.cmpi sge, %4, %5 : vector<1x128xi32>
    %c96_i32 = arith.constant 96 : i32
    %7 = vector.broadcast %c96_i32 : i32 to vector<1x128xi32>
    %8 = arith.cmpi slt, %4, %7 : vector<1x128xi32>
    %9 = arith.andi %6, %8 : vector<1x128xi1>
    %10 = vector.extract_strided_slice %0 {offsets = [0, 0], sizes = [1, 128], strides = [1, 1]} : vector<8x128xf32> to vector<1x128xf32>
    %cst = arith.constant dense<0.000000e+00> : vector<1x128xf32>
    %11 = tpu.matmul %2, %1, %cst {dimension_numbers = #tpu.dot_dimension_numbers<[1], [0], [0], [1], [0, 0, 1, 1], [], []>} : vector<1x32xf32>, vector<32x128xf32>, vector<1x128xf32> -> vector<1x128xf32>
    %12 = arith.addf %10, %11 : vector<1x128xf32>
    %13 = math.tanh %12 : vector<1x128xf32>
    %14 = arith.negf %12 : vector<1x128xf32>
    %15 = math.exp %14 : vector<1x128xf32>
    %cst_7 = arith.constant 1.000000e+00 : f32
    %16 = vector.broadcast %cst_7 : f32 to vector<1x128xf32>
    %17 = arith.addf %16, %15 : vector<1x128xf32>
    %18 = arith.divf %16, %17 : vector<1x128xf32>
    %19 = arith.select %9, %13, %18 : vector<1x128xi1>, vector<1x128xf32>
    %20 = vector.extract_strided_slice %19 {offsets = [0, 0], sizes = [1, 32], strides = [1, 1]} : vector<1x128xf32> to vector<1x32xf32>
    %21 = vector.extract_strided_slice %19 {offsets = [0, 32], sizes = [1, 32], strides = [1, 1]} : vector<1x128xf32> to vector<1x32xf32>
    %22 = vector.extract_strided_slice %19 {offsets = [0, 64], sizes = [1, 32], strides = [1, 1]} : vector<1x128xf32> to vector<1x32xf32>
    %23 = vector.extract_strided_slice %19 {offsets = [0, 96], sizes = [1, 32], strides = [1, 1]} : vector<1x128xf32> to vector<1x32xf32>
    %24 = arith.mulf %21, %3 : vector<1x32xf32>
    %25 = arith.mulf %20, %22 : vector<1x32xf32>
    %26 = arith.addf %24, %25 : vector<1x32xf32>
    %27 = math.tanh %26 : vector<1x32xf32>
    %28 = arith.mulf %23, %27 : vector<1x32xf32>
    %c0_8 = arith.constant 0 : index
    %c0_9 = arith.constant 0 : index
    %29 = vector.load %arg9[%c0_8, %c0_9] : memref<8x32xf32, #tpu.memory_space<vmem>>, vector<1x32xf32>
    tpu.vector_store %arg9[%c0_8, %c0_9], %28 {strides = array<i32>} : memref<8x32xf32, #tpu.memory_space<vmem>>, vector<1x32xf32>,
    %30 = vector.extract_strided_slice %0 {offsets = [1, 0], sizes = [1, 128], strides = [1, 1]} : vector<8x128xf32> to vector<1x128xf32>
    %cst_10 = arith.constant dense<0.000000e+00> : vector<1x128xf32>
    %31 = tpu.matmul %28, %1, %cst_10 {dimension_numbers = #tpu.dot_dimension_numbers<[1], [0], [0], [1], [0, 0, 1, 1], [], []>} : vector<1x32xf32>, vector<32x128xf32>, vector<1x128xf32> -> vector<1x128xf32>
    %32 = arith.addf %30, %31 : vector<1x128xf32>
    %33 = math.tanh %32 : vector<1x128xf32>
    %34 = arith.negf %32 : vector<1x128xf32>
    %35 = math.exp %34 : vector<1x128xf32>
    %cst_11 = arith.constant 1.000000e+00 : f32
    %36 = vector.broadcast %cst_11 : f32 to vector<1x128xf32>
    %37 = arith.addf %36, %35 : vector<1x128xf32>
    %38 = arith.divf %36, %37 : vector<1x128xf32>
    %39 = arith.select %9, %33, %38 : vector<1x128xi1>, vector<1x128xf32>
    %40 = vector.extract_strided_slice %39 {offsets = [0, 0], sizes = [1, 32], strides = [1, 1]} : vector<1x128xf32> to vector<1x32xf32>
    %41 = vector.extract_strided_slice %39 {offsets = [0, 32], sizes = [1, 32], strides = [1, 1]} : vector<1x128xf32> to vector<1x32xf32>
    %42 = vector.extract_strided_slice %39 {offsets = [0, 64], sizes = [1, 32], strides = [1, 1]} : vector<1x128xf32> to vector<1x32xf32>
    %43 = vector.extract_strided_slice %39 {offsets = [0, 96], sizes = [1, 32], strides = [1, 1]} : vector<1x128xf32> to vector<1x32xf32>
    %44 = arith.mulf %41, %26 : vector<1x32xf32>
    %45 = arith.mulf %40, %42 : vector<1x32xf32>
    %46 = arith.addf %44, %45 : vector<1x32xf32>
    %47 = math.tanh %46 : vector<1x32xf32>
    %48 = arith.mulf %43, %47 : vector<1x32xf32>
    %c1 = arith.constant 1 : index
    %c0_12 = arith.constant 0 : index
    %49 = vector.load %arg9[%c1, %c0_12] : memref<8x32xf32, #tpu.memory_space<vmem>>, vector<1x32xf32>
    tpu.vector_store %arg9[%c1, %c0_12], %48 {strides = array<i32>} : memref<8x32xf32, #tpu.memory_space<vmem>>, vector<1x32xf32>,
    %50 = vector.extract_strided_slice %0 {offsets = [2, 0], sizes = [1, 128], strides = [1, 1]} : vector<8x128xf32> to vector<1x128xf32>
    %cst_13 = arith.constant dense<0.000000e+00> : vector<1x128xf32>
    %51 = tpu.matmul %48, %1, %cst_13 {dimension_numbers = #tpu.dot_dimension_numbers<[1], [0], [0], [1], [0, 0, 1, 1], [], []>} : vector<1x32xf32>, vector<32x128xf32>, vector<1x128xf32> -> vector<1x128xf32>
    %52 = arith.addf %50, %51 : vector<1x128xf32>
    %53 = math.tanh %52 : vector<1x128xf32>
    %54 = arith.negf %52 : vector<1x128xf32>
    %55 = math.exp %54 : vector<1x128xf32>
    %cst_14 = arith.constant 1.000000e+00 : f32
    %56 = vector.broadcast %cst_14 : f32 to vector<1x128xf32>
    %57 = arith.addf %56, %55 : vector<1x128xf32>
    %58 = arith.divf %56, %57 : vector<1x128xf32>
    %59 = arith.select %9, %53, %58 : vector<1x128xi1>, vector<1x128xf32>
    %60 = vector.extract_strided_slice %59 {offsets = [0, 0], sizes = [1, 32], strides = [1, 1]} : vector<1x128xf32> to vector<1x32xf32>
    %61 = vector.extract_strided_slice %59 {offsets = [0, 32], sizes = [1, 32], strides = [1, 1]} : vector<1x128xf32> to vector<1x32xf32>
    %62 = vector.extract_strided_slice %59 {offsets = [0, 64], sizes = [1, 32], strides = [1, 1]} : vector<1x128xf32> to vector<1x32xf32>
    %63 = vector.extract_strided_slice %59 {offsets = [0, 96], sizes = [1, 32], strides = [1, 1]} : vector<1x128xf32> to vector<1x32xf32>
    %64 = arith.mulf %61, %46 : vector<1x32xf32>
    %65 = arith.mulf %60, %62 : vector<1x32xf32>
    %66 = arith.addf %64, %65 : vector<1x32xf32>
    %67 = math.tanh %66 : vector<1x32xf32>
    %68 = arith.mulf %63, %67 : vector<1x32xf32>
    %c2 = arith.constant 2 : index
    %c0_15 = arith.constant 0 : index
    %69 = vector.load %arg9[%c2, %c0_15] : memref<8x32xf32, #tpu.memory_space<vmem>>, vector<1x32xf32>
    tpu.vector_store %arg9[%c2, %c0_15], %68 {strides = array<i32>} : memref<8x32xf32, #tpu.memory_space<vmem>>, vector<1x32xf32>,
    %70 = vector.extract_strided_slice %0 {offsets = [3, 0], sizes = [1, 128], strides = [1, 1]} : vector<8x128xf32> to vector<1x128xf32>
    %cst_16 = arith.constant dense<0.000000e+00> : vector<1x128xf32>
    %71 = tpu.matmul %68, %1, %cst_16 {dimension_numbers = #tpu.dot_dimension_numbers<[1], [0], [0], [1], [0, 0, 1, 1], [], []>} : vector<1x32xf32>, vector<32x128xf32>, vector<1x128xf32> -> vector<1x128xf32>
    %72 = arith.addf %70, %71 : vector<1x128xf32>
    %73 = math.tanh %72 : vector<1x128xf32>
    %74 = arith.negf %72 : vector<1x128xf32>
    %75 = math.exp %74 : vector<1x128xf32>
    %cst_17 = arith.constant 1.000000e+00 : f32
    %76 = vector.broadcast %cst_17 : f32 to vector<1x128xf32>
    %77 = arith.addf %76, %75 : vector<1x128xf32>
    %78 = arith.divf %76, %77 : vector<1x128xf32>
    %79 = arith.select %9, %73, %78 : vector<1x128xi1>, vector<1x128xf32>
    %80 = vector.extract_strided_slice %79 {offsets = [0, 0], sizes = [1, 32], strides = [1, 1]} : vector<1x128xf32> to vector<1x32xf32>
    %81 = vector.extract_strided_slice %79 {offsets = [0, 32], sizes = [1, 32], strides = [1, 1]} : vector<1x128xf32> to vector<1x32xf32>
    %82 = vector.extract_strided_slice %79 {offsets = [0, 64], sizes = [1, 32], strides = [1, 1]} : vector<1x128xf32> to vector<1x32xf32>
    %83 = vector.extract_strided_slice %79 {offsets = [0, 96], sizes = [1, 32], strides = [1, 1]} : vector<1x128xf32> to vector<1x32xf32>
    %84 = arith.mulf %81, %66 : vector<1x32xf32>
    %85 = arith.mulf %80, %82 : vector<1x32xf32>
    %86 = arith.addf %84, %85 : vector<1x32xf32>
    %87 = math.tanh %86 : vector<1x32xf32>
    %88 = arith.mulf %83, %87 : vector<1x32xf32>
    %c3 = arith.constant 3 : index
    %c0_18 = arith.constant 0 : index
    %89 = vector.load %arg9[%c3, %c0_18] : memref<8x32xf32, #tpu.memory_space<vmem>>, vector<1x32xf32>
    tpu.vector_store %arg9[%c3, %c0_18], %88 {strides = array<i32>} : memref<8x32xf32, #tpu.memory_space<vmem>>, vector<1x32xf32>,
    %90 = vector.extract_strided_slice %0 {offsets = [4, 0], sizes = [1, 128], strides = [1, 1]} : vector<8x128xf32> to vector<1x128xf32>
    %cst_19 = arith.constant dense<0.000000e+00> : vector<1x128xf32>
    %91 = tpu.matmul %88, %1, %cst_19 {dimension_numbers = #tpu.dot_dimension_numbers<[1], [0], [0], [1], [0, 0, 1, 1], [], []>} : vector<1x32xf32>, vector<32x128xf32>, vector<1x128xf32> -> vector<1x128xf32>
    %92 = arith.addf %90, %91 : vector<1x128xf32>
    %93 = math.tanh %92 : vector<1x128xf32>
    %94 = arith.negf %92 : vector<1x128xf32>
    %95 = math.exp %94 : vector<1x128xf32>
    %cst_20 = arith.constant 1.000000e+00 : f32
    %96 = vector.broadcast %cst_20 : f32 to vector<1x128xf32>
    %97 = arith.addf %96, %95 : vector<1x128xf32>
    %98 = arith.divf %96, %97 : vector<1x128xf32>
    %99 = arith.select %9, %93, %98 : vector<1x128xi1>, vector<1x128xf32>
    %100 = vector.extract_strided_slice %99 {offsets = [0, 0], sizes = [1, 32], strides = [1, 1]} : vector<1x128xf32> to vector<1x32xf32>
    %101 = vector.extract_strided_slice %99 {offsets = [0, 32], sizes = [1, 32], strides = [1, 1]} : vector<1x128xf32> to vector<1x32xf32>
    %102 = vector.extract_strided_slice %99 {offsets = [0, 64], sizes = [1, 32], strides = [1, 1]} : vector<1x128xf32> to vector<1x32xf32>
    %103 = vector.extract_strided_slice %99 {offsets = [0, 96], sizes = [1, 32], strides = [1, 1]} : vector<1x128xf32> to vector<1x32xf32>
    %104 = arith.mulf %101, %86 : vector<1x32xf32>
    %105 = arith.mulf %100, %102 : vector<1x32xf32>
    %106 = arith.addf %104, %105 : vector<1x32xf32>
    %107 = math.tanh %106 : vector<1x32xf32>
    %108 = arith.mulf %103, %107 : vector<1x32xf32>
    %c4 = arith.constant 4 : index
    %c0_21 = arith.constant 0 : index
    %109 = vector.load %arg9[%c4, %c0_21] : memref<8x32xf32, #tpu.memory_space<vmem>>, vector<1x32xf32>
    tpu.vector_store %arg9[%c4, %c0_21], %108 {strides = array<i32>} : memref<8x32xf32, #tpu.memory_space<vmem>>, vector<1x32xf32>,
    %110 = vector.extract_strided_slice %0 {offsets = [5, 0], sizes = [1, 128], strides = [1, 1]} : vector<8x128xf32> to vector<1x128xf32>
    %cst_22 = arith.constant dense<0.000000e+00> : vector<1x128xf32>
    %111 = tpu.matmul %108, %1, %cst_22 {dimension_numbers = #tpu.dot_dimension_numbers<[1], [0], [0], [1], [0, 0, 1, 1], [], []>} : vector<1x32xf32>, vector<32x128xf32>, vector<1x128xf32> -> vector<1x128xf32>
    %112 = arith.addf %110, %111 : vector<1x128xf32>
    %113 = math.tanh %112 : vector<1x128xf32>
    %114 = arith.negf %112 : vector<1x128xf32>
    %115 = math.exp %114 : vector<1x128xf32>
    %cst_23 = arith.constant 1.000000e+00 : f32
    %116 = vector.broadcast %cst_23 : f32 to vector<1x128xf32>
    %117 = arith.addf %116, %115 : vector<1x128xf32>
    %118 = arith.divf %116, %117 : vector<1x128xf32>
    %119 = arith.select %9, %113, %118 : vector<1x128xi1>, vector<1x128xf32>
    %120 = vector.extract_strided_slice %119 {offsets = [0, 0], sizes = [1, 32], strides = [1, 1]} : vector<1x128xf32> to vector<1x32xf32>
    %121 = vector.extract_strided_slice %119 {offsets = [0, 32], sizes = [1, 32], strides = [1, 1]} : vector<1x128xf32> to vector<1x32xf32>
    %122 = vector.extract_strided_slice %119 {offsets = [0, 64], sizes = [1, 32], strides = [1, 1]} : vector<1x128xf32> to vector<1x32xf32>
    %123 = vector.extract_strided_slice %119 {offsets = [0, 96], sizes = [1, 32], strides = [1, 1]} : vector<1x128xf32> to vector<1x32xf32>
    %124 = arith.mulf %121, %106 : vector<1x32xf32>
    %125 = arith.mulf %120, %122 : vector<1x32xf32>
    %126 = arith.addf %124, %125 : vector<1x32xf32>
    %127 = math.tanh %126 : vector<1x32xf32>
    %128 = arith.mulf %123, %127 : vector<1x32xf32>
    %c5 = arith.constant 5 : index
    %c0_24 = arith.constant 0 : index
    %129 = vector.load %arg9[%c5, %c0_24] : memref<8x32xf32, #tpu.memory_space<vmem>>, vector<1x32xf32>
    tpu.vector_store %arg9[%c5, %c0_24], %128 {strides = array<i32>} : memref<8x32xf32, #tpu.memory_space<vmem>>, vector<1x32xf32>,
    %130 = vector.extract_strided_slice %0 {offsets = [6, 0], sizes = [1, 128], strides = [1, 1]} : vector<8x128xf32> to vector<1x128xf32>
    %cst_25 = arith.constant dense<0.000000e+00> : vector<1x128xf32>
    %131 = tpu.matmul %128, %1, %cst_25 {dimension_numbers = #tpu.dot_dimension_numbers<[1], [0], [0], [1], [0, 0, 1, 1], [], []>} : vector<1x32xf32>, vector<32x128xf32>, vector<1x128xf32> -> vector<1x128xf32>
    %132 = arith.addf %130, %131 : vector<1x128xf32>
    %133 = math.tanh %132 : vector<1x128xf32>
    %134 = arith.negf %132 : vector<1x128xf32>
    %135 = math.exp %134 : vector<1x128xf32>
    %cst_26 = arith.constant 1.000000e+00 : f32
    %136 = vector.broadcast %cst_26 : f32 to vector<1x128xf32>
    %137 = arith.addf %136, %135 : vector<1x128xf32>
    %138 = arith.divf %136, %137 : vector<1x128xf32>
    %139 = arith.select %9, %133, %138 : vector<1x128xi1>, vector<1x128xf32>
    %140 = vector.extract_strided_slice %139 {offsets = [0, 0], sizes = [1, 32], strides = [1, 1]} : vector<1x128xf32> to vector<1x32xf32>
    %141 = vector.extract_strided_slice %139 {offsets = [0, 32], sizes = [1, 32], strides = [1, 1]} : vector<1x128xf32> to vector<1x32xf32>
    %142 = vector.extract_strided_slice %139 {offsets = [0, 64], sizes = [1, 32], strides = [1, 1]} : vector<1x128xf32> to vector<1x32xf32>
    %143 = vector.extract_strided_slice %139 {offsets = [0, 96], sizes = [1, 32], strides = [1, 1]} : vector<1x128xf32> to vector<1x32xf32>
    %144 = arith.mulf %141, %126 : vector<1x32xf32>
    %145 = arith.mulf %140, %142 : vector<1x32xf32>
    %146 = arith.addf %144, %145 : vector<1x32xf32>
    %147 = math.tanh %146 : vector<1x32xf32>
    %148 = arith.mulf %143, %147 : vector<1x32xf32>
    %c6 = arith.constant 6 : index
    %c0_27 = arith.constant 0 : index
    %149 = vector.load %arg9[%c6, %c0_27] : memref<8x32xf32, #tpu.memory_space<vmem>>, vector<1x32xf32>
    tpu.vector_store %arg9[%c6, %c0_27], %148 {strides = array<i32>} : memref<8x32xf32, #tpu.memory_space<vmem>>, vector<1x32xf32>,
    %150 = vector.extract_strided_slice %0 {offsets = [7, 0], sizes = [1, 128], strides = [1, 1]} : vector<8x128xf32> to vector<1x128xf32>
    %cst_28 = arith.constant dense<0.000000e+00> : vector<1x128xf32>
    %151 = tpu.matmul %148, %1, %cst_28 {dimension_numbers = #tpu.dot_dimension_numbers<[1], [0], [0], [1], [0, 0, 1, 1], [], []>} : vector<1x32xf32>, vector<32x128xf32>, vector<1x128xf32> -> vector<1x128xf32>
    %152 = arith.addf %150, %151 : vector<1x128xf32>
    %153 = math.tanh %152 : vector<1x128xf32>
    %154 = arith.negf %152 : vector<1x128xf32>
    %155 = math.exp %154 : vector<1x128xf32>
    %cst_29 = arith.constant 1.000000e+00 : f32
    %156 = vector.broadcast %cst_29 : f32 to vector<1x128xf32>
    %157 = arith.addf %156, %155 : vector<1x128xf32>
    %158 = arith.divf %156, %157 : vector<1x128xf32>
    %159 = arith.select %9, %153, %158 : vector<1x128xi1>, vector<1x128xf32>
    %160 = vector.extract_strided_slice %159 {offsets = [0, 0], sizes = [1, 32], strides = [1, 1]} : vector<1x128xf32> to vector<1x32xf32>
    %161 = vector.extract_strided_slice %159 {offsets = [0, 32], sizes = [1, 32], strides = [1, 1]} : vector<1x128xf32> to vector<1x32xf32>
    %162 = vector.extract_strided_slice %159 {offsets = [0, 64], sizes = [1, 32], strides = [1, 1]} : vector<1x128xf32> to vector<1x32xf32>
    %163 = vector.extract_strided_slice %159 {offsets = [0, 96], sizes = [1, 32], strides = [1, 1]} : vector<1x128xf32> to vector<1x32xf32>
    %164 = arith.mulf %161, %146 : vector<1x32xf32>
    %165 = arith.mulf %160, %162 : vector<1x32xf32>
    %166 = arith.addf %164, %165 : vector<1x32xf32>
    %167 = math.tanh %166 : vector<1x32xf32>
    %168 = arith.mulf %163, %167 : vector<1x32xf32>
    %c7 = arith.constant 7 : index
    %c0_30 = arith.constant 0 : index
    %169 = vector.load %arg9[%c7, %c0_30] : memref<8x32xf32, #tpu.memory_space<vmem>>, vector<1x32xf32>
    tpu.vector_store %arg9[%c7, %c0_30], %168 {strides = array<i32>} : memref<8x32xf32, #tpu.memory_space<vmem>>, vector<1x32xf32>,
    %c0_31 = arith.constant 0 : index
    %c0_32 = arith.constant 0 : index
    %170 = vector.load %arg9[%c0_31, %c0_32] : memref<8x32xf32, #tpu.memory_space<vmem>>, vector<8x32xf32>
    %c0_33 = arith.constant 0 : index
    %c0_34 = arith.constant 0 : index
    %171 = vector.load %arg2[%c0_33, %c0_34] : memref<32x8xf32, #tpu.memory_space<vmem>>, vector<32x8xf32>
    %cst_35 = arith.constant dense<0.000000e+00> : vector<8x8xf32>
    %172 = tpu.matmul %170, %171, %cst_35 {dimension_numbers = #tpu.dot_dimension_numbers<[1], [0], [0], [1], [0, 0, 1, 1], [], []>} : vector<8x32xf32>, vector<32x8xf32>, vector<8x8xf32> -> vector<8x8xf32>
    %c0_36 = arith.constant 0 : index
    %c0_37 = arith.constant 0 : index
    %173 = vector.load %arg3[%c0_36, %c0_37] : memref<1x8xf32, #tpu.memory_space<vmem>>, vector<1x8xf32>
    %174 = vector.broadcast %173 : vector<1x8xf32> to vector<8x8xf32>
    %175 = arith.addf %172, %174 : vector<8x8xf32>
    %c0_38 = arith.constant 0 : index
    %c0_39 = arith.constant 0 : index
    %176 = vector.load %arg6[%c0_38, %c0_39] : memref<8x8xf32, #tpu.memory_space<vmem>>, vector<8x8xf32>
    tpu.vector_store %arg6[%c0_38, %c0_39], %175 {strides = array<i32>} : memref<8x8xf32, #tpu.memory_space<vmem>>, vector<8x8xf32>,
    %c0_40 = arith.constant 0 : index
    %c0_41 = arith.constant 0 : index
    %177 = vector.load %arg7[%c0_40, %c0_41] : memref<1x32xf32, #tpu.memory_space<vmem>>, vector<1x32xf32>
    tpu.vector_store %arg7[%c0_40, %c0_41], %168 {strides = array<i32>} : memref<1x32xf32, #tpu.memory_space<vmem>>, vector<1x32xf32>,
    %c0_42 = arith.constant 0 : index
    %c0_43 = arith.constant 0 : index
    %178 = vector.load %arg8[%c0_42, %c0_43] : memref<1x32xf32, #tpu.memory_space<vmem>>, vector<1x32xf32>
    tpu.vector_store %arg8[%c0_42, %c0_43], %166 {strides = array<i32>} : memref<1x32xf32, #tpu.memory_space<vmem>>, vector<1x32xf32>,
    return
  }
}

</mosaic_0001>

<bundles_post_ra>
// kernel: lstm_tagger_forward.1
= control target key start
LH: loop header
LB: loop body
LE: loop exit
PB: predicated region body
PF: predicated region fallthrough
CT: control target
= control target key end

     0   :  { %14 = vsyncpa [#allocation4], 0  ;;  %v1436_v3 = vmov 0.0|0.0   ;;  %vm1437_vm0 = vmmov 0   ;;  %v1438_v6 = vmov 0.0   ;;  %s1712_s0 = inlined_call_operand.vmem [shape: f32[8,128], index: 0, kind: input, shape index: {}]   ;;  %s1713_s1 = inlined_call_operand.vmem [shape: f32[32,128], index: 1, kind: input, shape index: {}]   ;;  %s1714_s2 = inlined_call_operand.vmem [shape: f32[32,8], index: 2, kind: input, shape index: {}]   ;;  %s1715_s3 = inlined_call_operand.vmem [shape: f32[1,8], index: 3, kind: input, shape index: {}]   ;;  %s1716_s4 = inlined_call_operand.vmem [shape: f32[1,32], index: 4, kind: input, shape index: {}]   ;;  %s1717_s5 = inlined_call_operand.vmem [shape: f32[1,32], index: 5, kind: input, shape index: {}]   ;;  %s1718_s6 = inlined_call_operand.hbm [shape: f32[8,8], index: 6, kind: output, shape index: {0}]   ;;  %s1719_s7 = inlined_call_operand.hbm [shape: f32[1,32], index: 7, kind: output, shape index: {1}]   ;;  %s1720_s8 = inlined_call_operand.hbm [shape: f32[1,32], index: 8, kind: output, shape index: {2}]  }
   0x1   :  { %v29_v0 = vld [vmem:[%s1713_s1] sm:$0xff]  ;;  %v30_v1 = vld [vmem:[%s1713_s1 + $0x8] sm:$0xff]  ;;  %v31_v2 = vld [vmem:[%s1713_s1 + $0x10] sm:$0xff]  ;;  %1239 = vmatprep.subr.bf16.mxu0 %v1436_v3  ;;  %1148 = vmatprep.mubr.msk.f32.mxu0 %vm1437_vm0, %v1438_v6 }
   0x2   :  { %v1500_v4 = vpack.c.bf16 %v30_v1, %v29_v0  ;;  %v32_v5 = vld [vmem:[%s1713_s1 + $0x18] sm:$0xff]  ;;  %1245 = vmatprep.subr.bf16.mxu1 %v1436_v3  ;;  %1159 = vmatprep.mubr.msk.f32.mxu1 %vm1437_vm0, %v1438_v6 }
   0x3   :  { %15 = vsyncpa [#allocation6], 0  ;;  %v1511_v7 = vpack.c.bf16 %v32_v5, %v31_v2  ;;  %v33_v8 = vld [vmem:[%s1716_s4] sm:$0x1]  ;;  %vm40_vm1 = vcmask 261120   ;;  %v35_v15 = vlaneseq  ;;  %s1440_s17 = smov 32  }
   0x4   :  { %1241 = vmatpush3.bf16.msra.mxu0 %v1500_v4  ;;  %1247 = vmatpush3.bf16.msra.mxu1 %v1500_v4  ;;  %v1533_v9 = vld [vmem:[%s1712_s0] sm:$0xff]  ;;  %s1439_s0 = smov 64   ;;  %vm152_vm5 = vcmask 253952   ;;  %vm262_vm6 = vcmask 254977   ;;  %vm488_vm7 = vcmask 257027   ;;  %vm714_vm8 = vcmask 259077  }
   0x5   :  { %1242 = vmatprep.subr.bf16.mxu0 %v1436_v3  ;;  %1248 = vmatprep.subr.bf16.mxu1 %v1436_v3  ;;  %v36_v17 = vand.u32 127, %v35_v15  ;;  %v1078_v22 = vld [vmem:[%s1717_s5] ss:$0 sm:$0xff]  ;;  %s1441_s5 = smov 96   ;;  %vm375_vm9 = vcmask 256002   ;;  %vm601_vm10 = vcmask 258052  }
   0x6   :  { %vm827_vm11 = vcmask 260102   ;;  %vm940_vm12 = vcmask 261127  }
   0x7   :  { %vm37_vm2 = vcmp.ge.s32.totalorder %v36_v17, 64  ;;  %vm38_vm3 = vcmp.lt.s32.totalorder %v36_v17, 96 }
   0x8   :  { %1244 = vmatpush3.bf16.msra.mxu0 %v1511_v7  ;;  %1250 = vmatpush3.bf16.msra.mxu1 %v1511_v7  ;;  %vm1536_vm4 = vmand %vm37_vm2, %vm38_vm3 }
   0x9   :  { %1251 = vmatprep.subr.bf16.mxu0 %v1436_v3  ;;  %1257 = vmatprep.subr.bf16.mxu1 %v1436_v3 }
   0xb   :  { %1149 = vmatmul.mubr.msk.f32.vlgmr.msra.gmra.mrb[0].mxu0 %vm40_vm1, %v33_v8 }
   0xc   :  { %1253 = vmatpush3.bf16.msra.mxu0 %v1500_v4  ;;  %1170 = vmatprep.mubr.msk.f32.mxu0 %vm1437_vm0, %v1438_v6 }
   0xd   :  { %1254 = vmatprep.subr.bf16.mxu0 %v1436_v3 }
  0x10   :  { %1256 = vmatpush3.bf16.msra.mxu0 %v1511_v7 }
  0x11   :  { %1263 = vmatprep.subr.bf16.mxu0 %v1436_v3 }
  0xde   :  { %v110_v10 = vpop.f32.mrb[0].mxu0 }
  0xdf   :  { %v114_v11 = vadd.f32 %v110_v10, %v1533_v9  ;;  %v1150_v12 = vpop.f32.mrb[1].mxu0 }
  0xe1   :  { %v1077_v13 = vmul.f32 -1.442695, %v114_v11 }
  0xe3   :  { %1302 = vpow2.f32 %v1077_v13 }
  0xe4   :  { %1304 = vtanh.f32 %v114_v11 }
  0xed   :  { %v1303_v14 = vpop.eup %1302 }
  0xee   :  { %v119_v16 = vadd.f32 1.0, %v1303_v14  ;;  %v1305_v19 = vpop.eup %1304 }
  0xf0   :  { %1306 = vrcp.f32 %v119_v16 }
  0xfa   :  { %v1307_v20 = vpop.eup %1306 }
  0xfb   :  { %v122_v21 = vsel %vm1536_vm4, %v1305_v19, %v1307_v20 }
  0xfc   :  { %133 = vrot.lane.b32.xlu0 %v122_v21, %s1439_s0 }
 0x100   :  { %128 = vrot.lane.b32.xlu0 %v1078_v22, %s1440_s17 }
 0x16e   :  { %v134_v23 = vpop.permute.xlu0 %133 }
 0x16f   :  { %v136_v24 = vmul.f32 %v134_v23, %v122_v21 }
 0x171   :  { %138 = vrot.lane.b32.xlu1 %v136_v24, %s1440_s17 }
 0x172   :  { %v129_v25 = vpop.permute.xlu0 %128 }
 0x173   :  { %v131_v26 = vmul.f32 %v129_v25, %v122_v21 }
 0x1e3   :  { %v139_v27 = vpop.permute.xlu1 %138 }
 0x1e4   :  { %v141_v28 = vadd.f32 %v139_v27, %v131_v26 }
 0x1e6   :  { %1308 = vtanh.f32 %v141_v28  ;;  %v239_v45 = vrot.slane %v141_v28, 7 }
 0x1f0   :  { %v1309_v29 = vpop.eup %1308 }
 0x1f1   :  { %144 = vrot.lane.b32.xlu1 %v1309_v29, %s1439_s0 }
 0x263   :  { %v145_v30 = vpop.permute.xlu1 %144 }
 0x264   :  { %v147_v31 = vmul.f32 %v145_v30, %v122_v21 }
 0x266   :  { %149 = vrot.lane.b32.xlu0 %v147_v31, %s1440_s17 }
 0x2d8   :  { %v150_v32 = vpop.permute.xlu0 %149 }
 0x2d9   :  { %153 = vst.msk [vmem:[#allocation2] sm:$0x1] %vm152_vm5, %v150_v32  ;;  %1160 = vmatmul.mubr.msk.f32.vlgmr.msra.gmra.mrb[0].mxu1 %vm40_vm1, %v150_v32 }
 0x2da   :  { %1259 = vmatpush3.bf16.msra.mxu1 %v1500_v4  ;;  %1181 = vmatprep.mubr.msk.f32.mxu1 %vm1437_vm0, %v1438_v6 }
 0x2db   :  { %1260 = vmatprep.subr.bf16.mxu1 %v1436_v3 }
 0x2de   :  { %1262 = vmatpush3.bf16.msra.mxu1 %v1511_v7 }
 0x2df   :  { %1269 = vmatprep.subr.bf16.mxu1 %v1436_v3 }
 0x3ac   :  { %v222_v33 = vpop.f32.mrb[0].mxu1 }
 0x3ad   :  { %v227_v34 = vrot.slane %v222_v33, 7  ;;  %v1161_v35 = vpop.f32.mrb[1].mxu1 }
 0x3af   :  { %v229_v36 = vadd.f32 %v227_v34, %v1533_v9 }
 0x3b1   :  { %v1080_v37 = vmul.f32 -1.442695, %v229_v36 }
 0x3b3   :  { %1310 = vpow2.f32 %v1080_v37 }
 0x3b4   :  { %1312 = vtanh.f32 %v229_v36 }
 0x3bd   :  { %v1311_v38 = vpop.eup %1310 }
 0x3be   :  { %v234_v39 = vadd.f32 1.0, %v1311_v38  ;;  %v1313_v40 = vpop.eup %1312 }
 0x3c0   :  { %1314 = vrcp.f32 %v234_v39 }
 0x3ca   :  { %v1315_v41 = vpop.eup %1314 }
 0x3cb   :  { %v237_v42 = vsel %vm1536_vm4, %v1313_v40, %v1315_v41 }
 0x3cc   :  { %243 = vrot.lane.b32.xlu1 %v237_v42, %s1439_s0  ;;  %v241_v46 = vmul.f32 %v239_v45, %v237_v42 }
 0x43e   :  { %v244_v43 = vpop.permute.xlu1 %243 }
 0x43f   :  { %v246_v44 = vmul.f32 %v244_v43, %v237_v42 }
 0x441   :  { %248 = vrot.lane.b32.xlu0 %v246_v44, %s1440_s17 }
 0x4b3   :  { %v249_v47 = vpop.permute.xlu0 %248 }
 0x4b4   :  { %v251_v48 = vadd.f32 %v249_v47, %v241_v46 }
 0x4b6   :  { %1316 = vtanh.f32 %v251_v48  ;;  %v352_v2 = vrot.slane %v251_v48, 7 }
 0x4c0   :  { %v1317_v49 = vpop.eup %1316 }
 0x4c1   :  { %254 = vrot.lane.b32.xlu1 %v1317_v49, %s1439_s0 }
 0x533   :  { %v255_v50 = vpop.permute.xlu1 %254 }
 0x534   :  { %v1563_v51 = vmul.f32 %v255_v50, %v237_v42 }
 0x536   :  { %v264_v52 = vrot.slane %v1563_v51, 1 }
 0x538   :  { %265 = vrot.lane.b32.xlu0 %v264_v52, %s1440_s17 }
 0x5aa   :  { %v266_v53 = vpop.permute.xlu0 %265 }
 0x5ab   :  { %1171 = vmatmul.mubr.msk.f32.vlgmr.msra.gmra.mrb[2].mxu0 %vm40_vm1, %v266_v53 }
 0x5ac   :  { %1265 = vmatpush3.bf16.msra.mxu0 %v1500_v4  ;;  %1192 = vmatprep.mubr.msk.f32.mxu0 %vm1437_vm0, %v1438_v6 }
 0x5ad   :  { %1266 = vmatprep.subr.bf16.mxu0 %v1436_v3 }
 0x5b0   :  { %1268 = vmatpush3.bf16.msra.mxu0 %v1511_v7 }
 0x5b1   :  { %1275 = vmatprep.subr.bf16.mxu0 %v1436_v3 }
 0x67e   :  { %v335_v54 = vpop.f32.mrb[2].mxu0 }
 0x67f   :  { %v340_v55 = vrot.slane %v335_v54, 6  ;;  %v1172_v56 = vpop.f32.mrb[3].mxu0 }
 0x681   :  { %v342_v57 = vadd.f32 %v340_v55, %v1533_v9 }
 0x683   :  { %v1082_v58 = vmul.f32 -1.442695, %v342_v57 }
 0x685   :  { %1318 = vpow2.f32 %v1082_v58 }
 0x686   :  { %1320 = vtanh.f32 %v342_v57 }
 0x68f   :  { %v1319_v59 = vpop.eup %1318 }
 0x690   :  { %v347_v60 = vadd.f32 1.0, %v1319_v59  ;;  %v1321_v61 = vpop.eup %1320 }
 0x692   :  { %1322 = vrcp.f32 %v347_v60 }
 0x69c   :  { %v1323_v62 = vpop.eup %1322 }
 0x69d   :  { %v350_v63 = vsel %vm1536_vm4, %v1321_v61, %v1323_v62 }
 0x69e   :  { %356 = vrot.lane.b32.xlu1 %v350_v63, %s1439_s0  ;;  %v354_v5 = vmul.f32 %v352_v2, %v350_v63 }
 0x710   :  { %v357_v0 = vpop.permute.xlu1 %356 }
 0x711   :  { %v359_v1 = vmul.f32 %v357_v0, %v350_v63 }
 0x713   :  { %361 = vrot.lane.b32.xlu0 %v359_v1, %s1440_s17 }
 0x785   :  { %v362_v8 = vpop.permute.xlu0 %361 }
 0x786   :  { %v364_v10 = vadd.f32 %v362_v8, %v354_v5 }
 0x788   :  { %1324 = vtanh.f32 %v364_v10  ;;  %v465_v29 = vrot.slane %v364_v10, 7 }
 0x792   :  { %v1325_v11 = vpop.eup %1324 }
 0x793   :  { %367 = vrot.lane.b32.xlu1 %v1325_v11, %s1439_s0 }
 0x805   :  { %v368_v12 = vpop.permute.xlu1 %367 }
 0x806   :  { %v1580_v13 = vmul.f32 %v368_v12, %v350_v63 }
 0x808   :  { %v377_v14 = vrot.slane %v1580_v13, 2 }
 0x80a   :  { %378 = vrot.lane.b32.xlu0 %v377_v14, %s1440_s17 }
 0x87c   :  { %v379_v15 = vpop.permute.xlu0 %378 }
 0x87d   :  { %1182 = vmatmul.mubr.msk.f32.vlgmr.msra.gmra.mrb[2].mxu1 %vm40_vm1, %v379_v15 }
 0x87e   :  { %1271 = vmatpush3.bf16.msra.mxu1 %v1500_v4  ;;  %1203 = vmatprep.mubr.msk.f32.mxu1 %vm1437_vm0, %v1438_v6 }
 0x87f   :  { %1272 = vmatprep.subr.bf16.mxu1 %v1436_v3 }
 0x882   :  { %1274 = vmatpush3.bf16.msra.mxu1 %v1511_v7 }
 0x883   :  { %1281 = vmatprep.subr.bf16.mxu1 %v1436_v3 }
 0x950   :  { %v448_v16 = vpop.f32.mrb[2].mxu1 }
 0x951   :  { %v453_v17 = vrot.slane %v448_v16, 5  ;;  %v1183_v19 = vpop.f32.mrb[3].mxu1 }
 0x953   :  { %v455_v20 = vadd.f32 %v453_v17, %v1533_v9 }
 0x955   :  { %v1084_v21 = vmul.f32 -1.442695, %v455_v20 }
 0x957   :  { %1326 = vpow2.f32 %v1084_v21 }
 0x958   :  { %1328 = vtanh.f32 %v455_v20 }
 0x961   :  { %v1327_v22 = vpop.eup %1326 }
 0x962   :  { %v460_v23 = vadd.f32 1.0, %v1327_v22  ;;  %v1329_v24 = vpop.eup %1328 }
 0x964   :  { %1330 = vrcp.f32 %v460_v23 }
 0x96e   :  { %v1331_v25 = vpop.eup %1330 }
 0x96f   :  { %v463_v26 = vsel %vm1536_vm4, %v1329_v24, %v1331_v25 }
 0x970   :  { %469 = vrot.lane.b32.xlu1 %v463_v26, %s1439_s0  ;;  %v467_v30 = vmul.f32 %v465_v29, %v463_v26 }
 0x9e2   :  { %v470_v27 = vpop.permute.xlu1 %469 }
 0x9e3   :  { %v472_v28 = vmul.f32 %v470_v27, %v463_v26 }
 0x9e5   :  { %474 = vrot.lane.b32.xlu0 %v472_v28, %s1440_s17 }
 0xa57   :  { %v475_v31 = vpop.permute.xlu0 %474 }
 0xa58   :  { %v477_v32 = vadd.f32 %v475_v31, %v467_v30 }
 0xa5a   :  { %1332 = vtanh.f32 %v477_v32  ;;  %v578_v50 = vrot.slane %v477_v32, 7 }
 0xa64   :  { %v1333_v33 = vpop.eup %1332 }
 0xa65   :  { %480 = vrot.lane.b32.xlu1 %v1333_v33, %s1439_s0 }
 0xad7   :  { %v481_v34 = vpop.permute.xlu1 %480 }
 0xad8   :  { %v1597_v35 = vmul.f32 %v481_v34, %v463_v26 }
 0xada   :  { %v490_v36 = vrot.slane %v1597_v35, 3 }
 0xadc   :  { %491 = vrot.lane.b32.xlu0 %v490_v36, %s1440_s17 }
 0xb4e   :  { %v492_v37 = vpop.permute.xlu0 %491 }
 0xb4f   :  { %1193 = vmatmul.mubr.msk.f32.vlgmr.msra.gmra.mrb[4].mxu0 %vm40_vm1, %v492_v37 }
 0xb50   :  { %1277 = vmatpush3.bf16.msra.mxu0 %v1500_v4  ;;  %1214 = vmatprep.mubr.msk.f32.mxu0 %vm1437_vm0, %v1438_v6 }
 0xb51   :  { %1278 = vmatprep.subr.bf16.mxu0 %v1436_v3 }
 0xb54   :  { %1280 = vmatpush3.bf16.msra.mxu0 %v1511_v7 }
 0xb55   :  { %1287 = vmatprep.subr.bf16.mxu0 %v1436_v3 }
 0xc22   :  { %v561_v38 = vpop.f32.mrb[4].mxu0 }
 0xc23   :  { %v566_v39 = vrot.slane %v561_v38, 4  ;;  %v1194_v40 = vpop.f32.mrb[5].mxu0 }
 0xc25   :  { %v568_v41 = vadd.f32 %v566_v39, %v1533_v9 }
 0xc27   :  { %v1086_v42 = vmul.f32 -1.442695, %v568_v41 }
 0xc29   :  { %1334 = vpow2.f32 %v1086_v42 }
 0xc2a   :  { %1336 = vtanh.f32 %v568_v41 }
 0xc33   :  { %v1335_v43 = vpop.eup %1334 }
 0xc34   :  { %v573_v44 = vadd.f32 1.0, %v1335_v43  ;;  %v1337_v45 = vpop.eup %1336 }
 0xc36   :  { %1338 = vrcp.f32 %v573_v44 }
 0xc40   :  { %v1339_v46 = vpop.eup %1338 }
 0xc41   :  { %v576_v47 = vsel %vm1536_vm4, %v1337_v45, %v1339_v46 }
 0xc42   :  { %582 = vrot.lane.b32.xlu1 %v576_v47, %s1439_s0  ;;  %v580_v52 = vmul.f32 %v578_v50, %v576_v47 }
 0xcb4   :  { %v583_v48 = vpop.permute.xlu1 %582 }
 0xcb5   :  { %v585_v49 = vmul.f32 %v583_v48, %v576_v47 }
 0xcb7   :  { %587 = vrot.lane.b32.xlu0 %v585_v49, %s1440_s17 }
 0xd29   :  { %v588_v53 = vpop.permute.xlu0 %587 }
 0xd2a   :  { %v590_v54 = vadd.f32 %v588_v53, %v580_v52 }
 0xd2c   :  { %1340 = vtanh.f32 %v590_v54  ;;  %v691_v11 = vrot.slane %v590_v54, 7 }
 0xd36   :  { %v1341_v55 = vpop.eup %1340 }
 0xd37   :  { %593 = vrot.lane.b32.xlu1 %v1341_v55, %s1439_s0 }
 0xda9   :  { %v594_v56 = vpop.permute.xlu1 %593 }
 0xdaa   :  { %v1614_v57 = vmul.f32 %v594_v56, %v576_v47 }
 0xdac   :  { %v603_v58 = vrot.slane %v1614_v57, 4 }
 0xdae   :  { %604 = vrot.lane.b32.xlu0 %v603_v58, %s1440_s17 }
 0xe20   :  { %v605_v59 = vpop.permute.xlu0 %604 }
 0xe21   :  { %1204 = vmatmul.mubr.msk.f32.vlgmr.msra.gmra.mrb[4].mxu1 %vm40_vm1, %v605_v59 }
 0xe22   :  { %1283 = vmatpush3.bf16.msra.mxu1 %v1500_v4  ;;  %1225 = vmatprep.mubr.msk.f32.mxu1 %vm1437_vm0, %v1438_v6 }
 0xe23   :  { %1284 = vmatprep.subr.bf16.mxu1 %v1436_v3 }
 0xe26   :  { %1286 = vmatpush3.bf16.msra.mxu1 %v1511_v7 }
 0xef4   :  { %v674_v60 = vpop.f32.mrb[4].mxu1 }
 0xef5   :  { %v679_v61 = vrot.slane %v674_v60, 3  ;;  %v1205_v62 = vpop.f32.mrb[5].mxu1 }
 0xef7   :  { %v681_v63 = vadd.f32 %v679_v61, %v1533_v9 }
 0xef9   :  { %v1088_v0 = vmul.f32 -1.442695, %v681_v63 }
 0xefb   :  { %1342 = vpow2.f32 %v1088_v0 }
 0xefc   :  { %1344 = vtanh.f32 %v681_v63 }
 0xf05   :  { %v1343_v1 = vpop.eup %1342 }
 0xf06   :  { %v686_v2 = vadd.f32 1.0, %v1343_v1  ;;  %v1345_v5 = vpop.eup %1344 }
 0xf08   :  { %1346 = vrcp.f32 %v686_v2 }
 0xf12   :  { %v1347_v4 = vpop.eup %1346 }
 0xf13   :  { %v689_v8 = vsel %vm1536_vm4, %v1345_v5, %v1347_v4 }
 0xf14   :  { %695 = vrot.lane.b32.xlu1 %v689_v8, %s1439_s0  ;;  %v693_v12 = vmul.f32 %v691_v11, %v689_v8 }
 0xf86   :  { %v696_v10 = vpop.permute.xlu1 %695 }
 0xf87   :  { %v698_v7 = vmul.f32 %v696_v10, %v689_v8 }
 0xf89   :  { %700 = vrot.lane.b32.xlu0 %v698_v7, %s1440_s17 }
 0xffb   :  { %v701_v14 = vpop.permute.xlu0 %700 }
 0xffc   :  { %v703_v15 = vadd.f32 %v701_v14, %v693_v12 }
 0xffe   :  { %1348 = vtanh.f32 %v703_v15  ;;  %v804_v33 = vrot.slane %v703_v15, 7 }
0x1008   :  { %v1349_v16 = vpop.eup %1348 }
0x1009   :  { %706 = vrot.lane.b32.xlu1 %v1349_v16, %s1439_s0 }
0x107b   :  { %v707_v17 = vpop.permute.xlu1 %706 }
0x107c   :  { %v709_v19 = vmul.f32 %v707_v17, %v689_v8 }
0x107e   :  { %v716_v20 = vrot.slane %v709_v19, 5 }
0x1080   :  { %717 = vrot.lane.b32.xlu0 %v716_v20, %s1440_s17 }
0x10f2   :  { %v718_v21 = vpop.permute.xlu0 %717 }
0x10f3   :  { %1215 = vmatmul.mubr.msk.f32.vlgmr.msra.gmra.mrb[6].mxu0 %vm40_vm1, %v718_v21 }
0x10f4   :  { %1236 = vmatprep.mubr.msk.f32.mxu0 %vm1437_vm0, %v1438_v6 }
0x11c6   :  { %v787_v22 = vpop.f32.mrb[6].mxu0 }
0x11c7   :  { %v792_v23 = vrot.slane %v787_v22, 2  ;;  %v1216_v24 = vpop.f32.mrb[7].mxu0 }
0x11c9   :  { %v794_v25 = vadd.f32 %v792_v23, %v1533_v9 }
0x11cb   :  { %v1090_v26 = vmul.f32 -1.442695, %v794_v25 }
0x11cd   :  { %1350 = vpow2.f32 %v1090_v26 }
0x11ce   :  { %1352 = vtanh.f32 %v794_v25 }
0x11d7   :  { %v1351_v27 = vpop.eup %1350 }
0x11d8   :  { %v799_v28 = vadd.f32 1.0, %v1351_v27  ;;  %v1353_v29 = vpop.eup %1352 }
0x11da   :  { %1354 = vrcp.f32 %v799_v28 }
0x11e4   :  { %v1355_v30 = vpop.eup %1354 }
0x11e5   :  { %v802_v31 = vsel %vm1536_vm4, %v1353_v29, %v1355_v30 }
0x11e6   :  { %808 = vrot.lane.b32.xlu1 %v802_v31, %s1439_s0  ;;  %v806_v34 = vmul.f32 %v804_v33, %v802_v31 }
0x1258   :  { %v809_v32 = vpop.permute.xlu1 %808 }
0x1259   :  { %v811_v6 = vmul.f32 %v809_v32, %v802_v31 }
0x125b   :  { %813 = vrot.lane.b32.xlu0 %v811_v6, %s1440_s17 }
0x12cd   :  { %v814_v36 = vpop.permute.xlu0 %813 }
0x12ce   :  { %v816_v37 = vadd.f32 %v814_v36, %v806_v34 }
0x12d0   :  { %1356 = vtanh.f32 %v816_v37 }
0x12da   :  { %v1357_v38 = vpop.eup %1356 }
0x12db   :  { %819 = vrot.lane.b32.xlu1 %v1357_v38, %s1439_s0 }
0x134d   :  { %v820_v39 = vpop.permute.xlu1 %819 }
0x134e   :  { %v822_v40 = vmul.f32 %v820_v39, %v802_v31 }
0x1350   :  { %v829_v41 = vrot.slane %v822_v40, 6 }
0x1352   :  { %830 = vrot.lane.b32.xlu0 %v829_v41, %s1440_s17 }
0x13c4   :  { %v831_v42 = vpop.permute.xlu0 %830 }
0x13c5   :  { %1226 = vmatmul.mubr.msk.f32.vlgmr.msra.gmra.mrb[6].mxu1 %vm40_vm1, %v831_v42 }
0x1498   :  { %v900_v43 = vpop.f32.mrb[6].mxu1 }
0x1499   :  { %v905_v44 = vrot.slane %v900_v43, 1  ;;  %v1227_v45 = vpop.f32.mrb[7].mxu1 }
0x149b   :  { %v907_v46 = vadd.f32 %v905_v44, %v1533_v9  ;;  %v917_v9 = vrot.slane %v816_v37, 7 }
0x149d   :  { %v1092_v47 = vmul.f32 -1.442695, %v907_v46 }
0x149f   :  { %1358 = vpow2.f32 %v1092_v47 }
0x14a0   :  { %1360 = vtanh.f32 %v907_v46 }
0x14a9   :  { %v1359_v48 = vpop.eup %1358 }
0x14aa   :  { %v912_v49 = vadd.f32 1.0, %v1359_v48  ;;  %v1361_v50 = vpop.eup %1360 }
0x14ac   :  { %1362 = vrcp.f32 %v912_v49 }
0x14b6   :  { %v1363_v52 = vpop.eup %1362 }
0x14b7   :  { %v915_v53 = vsel %vm1536_vm4, %v1361_v50, %v1363_v52 }
0x14b8   :  { %921 = vrot.lane.b32.xlu1 %v915_v53, %s1439_s0  ;;  %v919_v56 = vmul.f32 %v917_v9, %v915_v53 }
0x152a   :  { %v922_v54 = vpop.permute.xlu1 %921 }
0x152b   :  { %v924_v55 = vmul.f32 %v922_v54, %v915_v53 }
0x152d   :  { %926 = vrot.lane.b32.xlu0 %v924_v55, %s1440_s17 }
0x1531   :  { %259 = vrot.lane.b32.xlu0 %v1563_v51, %s1440_s17  ;;  %v943_v51 = vld [vmem:[%s1714_s2] sm:$0xff] }
0x1535   :  { %485 = vrot.lane.b32.xlu0 %v1597_v35, %s1440_s17  ;;  %v944_v35 = vld [vmem:[%s1714_s2 + $0x8] sm:$0xff] }
0x1536   :  { %v1288_v63 = vpack.c.bf16 %v944_v35, %v943_v51 }
0x1538   :  { %1289 = vmatpush3.bf16.msra.mxu0 %v1288_v63 }
0x1539   :  { %711 = vrot.lane.b32.xlu0 %v709_v19, %s1440_s17  ;;  %1290 = vmatprep.subr.bf16.mxu0 %v1436_v3 }
0x159f   :  { %v927_v58 = vpop.permute.xlu0 %926 }
0x15a0   :  { %v929_v59 = vadd.f32 %v927_v58, %v919_v56 }
0x15a2   :  { %1364 = vtanh.f32 %v929_v59 }
0x15a3   :  { %v260_v18 = vpop.permute.xlu0 %259 }
0x15a4   :  { %263 = vst.msk [vmem:[#allocation2] sm:$0x2] %vm262_vm6, %v260_v18 }
0x15a7   :  { %v486_v60 = vpop.permute.xlu0 %485 }
0x15a8   :  { %489 = vst.msk [vmem:[#allocation2] sm:$0x8] %vm488_vm7, %v486_v60 }
0x15ab   :  { %v712_v61 = vpop.permute.xlu0 %711 }
0x15ac   :  { %v1365_v62 = vpop.eup %1364  ;;  %715 = vst.msk [vmem:[#allocation2] sm:$0x20] %vm714_vm8, %v712_v61 }
0x15ad   :  { %932 = vrot.lane.b32.xlu1 %v1365_v62, %s1439_s0 }
0x15b1   :  { %372 = vrot.lane.b32.xlu1 %v1580_v13, %s1440_s17  ;;  %v945_v13 = vld [vmem:[%s1714_s2 + $0x10] sm:$0xff] }
0x15b5   :  { %598 = vrot.lane.b32.xlu1 %v1614_v57, %s1440_s17  ;;  %v946_v57 = vld [vmem:[%s1714_s2 + $0x18] sm:$0xff]  ;;  %s1442_s2 = smov [#allocation5]  }
0x15b6   :  { %v1291_v0 = vpack.c.bf16 %v946_v57, %v945_v13  ;;  %s1051_s26 = sshll.u32 %s1442_s2, 4  ;;  %s1052_s26 = int_to_ptr.vmem [resolvable:$true] %s1051_s26 }
0x15b7   :  { %s1366_s27 = scalar_lea.vmem %s1052_s26, 16  ;;  %s1370_s28 = scalar_lea.vmem %s1052_s26, 32 }
0x15b8   :  { %1292 = vmatpush3.bf16.msra.mxu0 %v1291_v0  ;;  %p1367_p0 = scmp.ne.s32.totalorder %s1052_s26, %s1366_s27  ;;  %p1371_p1 = scmp.lt.s32.totalorder %s1052_s26, %s1052_s26 }
0x15b9   :  { %824 = vrot.lane.b32.xlu1 %v822_v40, %s1440_s17  ;;  %p1372_p2 = scmp.lt.s32.totalorder %s1370_s28, %s1366_s27 }
0x15bb   :  { %p1373_p3 = por %p1372_p2, %p1371_p1 }
0x15bd   :  { %1031 = vrot.lane.b32.xlu1 %v929_v59, %s1441_s5  ;;  %p1374_p4 = pnand %p1373_p3, %p1367_p0 }
0x161f   :  { %v933_v1 = vpop.permute.xlu1 %932 }
0x1620   :  { %v935_v2 = vmul.f32 %v933_v1, %v915_v53 }
0x1622   :  { %937 = vrot.lane.b32.xlu0 %v935_v2, %s1440_s17 }
0x1623   :  { %v373_v5 = vpop.permute.xlu1 %372 }
0x1624   :  { %376 = vst.msk [vmem:[#allocation2] sm:$0x4] %vm375_vm9, %v373_v5 }
0x1627   :  { %v599_v4 = vpop.permute.xlu1 %598 }
0x1628   :  { %602 = vst.msk [vmem:[#allocation2] sm:$0x10] %vm601_vm10, %v599_v4 }
0x162b   :  { %v825_v8 = vpop.permute.xlu1 %824 }
0x162c   :  { %828 = vst.msk [vmem:[#allocation2] sm:$0x40] %vm827_vm11, %v825_v8 }
0x162f   :  { %v1032_v10 = vpop.permute.xlu1 %1031 }
0x1630   :  { %1034 = vst.msk [vmem:[#allocation7 - $0x7] sm:$0x80] %vm940_vm12, %v1032_v10 }
0x1694   :  { %v938_v7 = vpop.permute.xlu0 %937 }
0x1695   :  { %941 = vst.msk [vmem:[#allocation2] sm:$0x80] %vm940_vm12, %v938_v7  ;;  %1029 = vst.msk [vmem:[#allocation5 - $0x7] sm:$0x80] %vm940_vm12, %v938_v7 }
0x169c   :  { %v942_v3 = vld [vmem:[#allocation2] sm:$0xff] }
0x169d   :  { %1237 = vmatmul.mubr.msk.f32.vlgmr.msra.gmra.mrb[8].mxu0 %vm40_vm1, %v942_v3 }
0x169e   :  { %1377 = shalt.err (!%p1374_p4)
}
0x169f   :  { %s1378_s9 = scalar_lea.hbm %s1719_s7, 16 }
0x16a0   :  { %p1379_p5 = scmp.ne.s32.totalorder %s1719_s7, %s1378_s9  ;;  %p1382_p6 = scmp.lt.u32.totalorder %s1378_s9, %s1719_s7 }
0x16a2   :  { %p1384_p7 = pnand %p1382_p6, %p1379_p5 }
0x16a4   :  { %1387 = shalt.err (!%p1384_p7)
}
0x16a5   :  { %1054 = dma.vmem_to_hbm [thread:$0]  %s1052_s26, 16, %s1719_s7, [#allocation6]  }
0x16a6   :  { %s1443_s14 = smov [#allocation7]  }
0x16a7   :  { %s1061_s0 = sshll.u32 %s1443_s14, 4  ;;  %s1062_s0 = int_to_ptr.vmem [resolvable:$true] %s1061_s0 }
0x16a8   :  { %s1388_s15 = scalar_lea.vmem %s1062_s0, 16  ;;  %s1392_s16 = scalar_lea.vmem %s1062_s0, 32 }
0x16a9   :  { %p1389_p8 = scmp.ne.s32.totalorder %s1062_s0, %s1388_s15  ;;  %p1393_p9 = scmp.lt.s32.totalorder %s1062_s0, %s1062_s0 }
0x16aa   :  { %p1394_p10 = scmp.lt.s32.totalorder %s1392_s16, %s1388_s15 }
0x16ac   :  { %p1395_p11 = por %p1394_p10, %p1393_p9 }
0x16ae   :  { %p1396_p12 = pnand %p1395_p11, %p1389_p8 }
0x16b0   :  { %1399 = shalt.err (!%p1396_p12)
}
0x16b1   :  { %s1400_s18 = scalar_lea.hbm %s1720_s8, 16 }
0x16b2   :  { %p1401_p13 = scmp.ne.s32.totalorder %s1720_s8, %s1400_s18  ;;  %p1404_p0 = scmp.lt.u32.totalorder %s1400_s18, %s1720_s8 }
0x16b4   :  { %p1406_p1 = pnand %p1404_p0, %p1401_p13 }
0x16b6   :  { %1409 = shalt.err (!%p1406_p1)
}
0x16b7   :  { %1064 = dma.vmem_to_hbm [thread:$0]  %s1062_s0, 16, %s1720_s8, [#allocation6]   ;;  %v1093_v11 = vld [vmem:[%s1715_s3] ss:$0 sm:$0xff]  ;;  %vm1027_vm13 = vcmask 64512  }
0x16b8   :  { %s1444_s2 = smov [#allocation3]  }
0x16b9   :  { %s1041_s26 = sshll.u32 %s1444_s2, 4  ;;  %s1042_s26 = int_to_ptr.vmem [resolvable:$true] %s1041_s26 }
0x16ba   :  { %s1410_s27 = scalar_lea.vmem %s1042_s26, 128  ;;  %p1415_p3 = scmp.lt.s32.totalorder %s1042_s26, %s1042_s26 }
0x16bb   :  { %p1411_p2 = scmp.ne.s32.totalorder %s1042_s26, %s1410_s27  ;;  %p1416_p4 = scmp.lt.s32.totalorder %s1410_s27, %s1410_s27 }
0x16bd   :  { %p1417_p5 = por %p1416_p4, %p1415_p3 }
0x16bf   :  { %p1418_p6 = pnand %p1417_p5, %p1411_p2 }
0x1770   :  { %v1023_v12 = vpop.f32.mrb[8].mxu0 }
0x1771   :  { %v1024_v14 = vadd.f32 %v1093_v11, %v1023_v12  ;;  %v1238_v15 = vpop.f32.mrb[9].mxu0 }
0x1773   :  { %1028 = vst.msk [vmem:[#allocation3] sm:$0xff] %vm1027_vm13, %v1024_v14 }
0x1774   :  { %1421 = shalt.err (!%p1418_p6)
}
0x1775   :  { %s1422_s29 = scalar_lea.hbm %s1718_s6, 128 }
0x1776   :  { %p1423_p7 = scmp.ne.s32.totalorder %s1718_s6, %s1422_s29  ;;  %p1426_p8 = scmp.lt.u32.totalorder %s1422_s29, %s1718_s6 }
0x1778   :  { %p1428_p9 = pnand %p1426_p8, %p1423_p7 }
0x177a   :  { %1431 = shalt.err (!%p1428_p9)
}
0x177b   :  { %1044 = dma.vmem_to_hbm [thread:$0]  %s1042_s26, 128, %s1718_s6, [#allocation4]  }
0x177c   :  { %1432 = dma.done.wait [#allocation4], 128  }
0x177d   :  { %1433 = vsyncadd [#allocation4], 4294967168 }
0x177e   :  { %1434 = dma.done.wait [#allocation6], 32  }
0x177f   :  { %1435 = vsyncadd [#allocation6], 4294967264 }
0x1780   :  { %1074 = vsyncpa [#allocation4], 1 }
0x1781   :  { %1075 = vsyncpa [#allocation6], 1 }

</bundles_post_ra>
